<compile_context>
chip_gen: v6e
topology: v6e:2x2x1
jax: 0.10.0
libtpu: 0.0.40
codegen_flags: <defaults>
</compile_context>

<pallas_src>
import functools
import math

import jax
import jax.numpy as jnp
from jax.experimental import pallas as pl
from jax.experimental.pallas import tpu as pltpu


def _choose_block_rows(n_rows, l, p, itemsize, vmem_budget_bytes=8 * 1024 * 1024):
    """Rows per grid step: double-buffered [nb, L] in + [nb, L+P] out under budget."""
    per_row = 2 * (l + (l + p)) * itemsize          # x2 for double buffering
    nb = max(8, vmem_budget_bytes // per_row)
    if nb >= n_rows:
        return int(n_rows)                          # full extent is always legal
    return int((nb // 8) * 8)                       # keep sublane alignment


def _replication_pad_kernel(x_ref, o_ref, *, l, p):
    """One grid step: [rows, L] -> [rows, L+P] with the last column replicated."""
    x = x_ref[...]                                  # [rows, L]
    rows = x.shape[0]                               # static
    last = x[:, l - 1:l]                            # [rows, 1], static slice
    pad = jnp.broadcast_to(last, (rows, p))         # [rows, P]
    o_ref[...] = jnp.concatenate([x, pad], axis=-1)  # single full-tile store


def replication_pad1d(x, padding, *, block_rows=None):
    """torch ReplicationPad1d per the spec: append the last step padding[-1] times.

    x       : [..., L] (typically [B, C, L])
    padding : tuple; only padding[-1] (right pad) is used, mirroring the module.
    returns : [..., L + padding[-1]] in x.dtype
    """
    *lead, l = x.shape
    p = int(padding[-1])
    if p == 0:
        return x
    r = int(math.prod(lead)) if lead else 1
    x2d = x.reshape(r, l)                           # free row-major flatten

    nb = block_rows or _choose_block_rows(r, l, p, jnp.dtype(x.dtype).itemsize)

    out2d = pl.pallas_call(
        functools.partial(_replication_pad_kernel, l=l, p=p),
        out_shape=jax.ShapeDtypeStruct((r, l + p), x.dtype),
        grid_spec=pltpu.PrefetchScalarGridSpec(
            num_scalar_prefetch=0,
            grid=(pl.cdiv(r, nb),),
            in_specs=[pl.BlockSpec((nb, l), lambda i: (i, 0))],
            out_specs=pl.BlockSpec((nb, l + p), lambda i: (i, 0)),
        ),
        compiler_params=pltpu.CompilerParams(
            dimension_semantics=("parallel",)),
    )(x2d)
    return out2d.reshape(*lead, l + p)


def _reference_pad(x, padding):
    """Pure-jnp emulation of the torch module, for validation."""
    rep = jnp.repeat(x[:, :, -1:], padding[-1], axis=-1)
    return jnp.concatenate([x, rep], axis=-1)


if __name__ == "__main__":
    key = jax.random.PRNGKey(0)

    # Small shapes consistent with the module: x [B, n_vars, L], right pad = stride.
    B, n_vars, L = 2, 4, 16
    padding = (0, 8)

    x = jax.random.normal(key, (B, n_vars, L), dtype=jnp.float32)

    out = replication_pad1d(x, padding)
    out = jax.block_until_ready(out)

    ref = _reference_pad(x, padding)
    assert out.shape == ref.shape == (B, n_vars, L + padding[-1])
    assert jnp.array_equal(out, ref), "mismatch vs reference"

    print("KERNEL_OK")
</pallas_src>

<mosaic_0001>
module attributes {stable_mosaic.version = 11 : i64} {
  func.func @_replication_pad_kernel(%arg0: i32, %arg1: memref<8x16xf32, #tpu.memory_space<vmem>>, %arg2: memref<8x24xf32, #tpu.memory_space<vmem>>) attributes {dimension_semantics = [#tpu.dimension_semantics<parallel>], iteration_bounds = array<i64: 1>, scalar_prefetch = 0 : i64, scratch_operands = 0 : i64, tpu.core_type = #tpu.core_type<tc>, window_params = [{transform_indices = @transform_0, window_bounds = array<i64: 8, 16>}, {transform_indices = @transform_1, window_bounds = array<i64: 8, 24>}]} {
    %c0 = arith.constant 0 : index
    %c0_0 = arith.constant 0 : index
    %0 = vector.load %arg1[%c0, %c0_0] : memref<8x16xf32, #tpu.memory_space<vmem>>, vector<8x16xf32>
    %1 = vector.extract_strided_slice %0 {offsets = [0, 15], sizes = [8, 1], strides = [1, 1]} : vector<8x16xf32> to vector<8x1xf32>
    %2 = vector.shape_cast %1 : vector<8x1xf32> to vector<8x1xf32>
    %3 = vector.broadcast %2 : vector<8x1xf32> to vector<8x8xf32>
    %4 = tpu.concatenate %0, %3 in 1 : vector<8x16xf32>, vector<8x8xf32> -> vector<8x24xf32>
    %c0_1 = arith.constant 0 : index
    %c0_2 = arith.constant 0 : index
    %5 = vector.load %arg2[%c0_1, %c0_2] : memref<8x24xf32, #tpu.memory_space<vmem>>, vector<8x24xf32>
    tpu.vector_store %arg2[%c0_1, %c0_2], %4 {strides = array<i32>} : memref<8x24xf32, #tpu.memory_space<vmem>>, vector<8x24xf32>,
    return
  }
  func.func @transform_0(%arg0: i32) -> (i32, i32) {
    %c0_i32 = arith.constant 0 : i32
    %c0_i32_0 = arith.constant 0 : i32
    return %arg0, %c0_i32 : i32, i32
  }
  func.func @transform_1(%arg0: i32) -> (i32, i32) {
    %c0_i32 = arith.constant 0 : i32
    %c0_i32_0 = arith.constant 0 : i32
    return %arg0, %c0_i32 : i32, i32
  }
}

</mosaic_0001>

<bundles_post_ra>
// kernel: tpu_custom_call.1
= control target key start
LH: loop header
LB: loop body
LE: loop exit
PB: predicated region body
PF: predicated region fallthrough
CT: control target
= control target key end

     0   :  { %6 = vsyncpa [#allocation3], 0  ;;  %s113_s0 = inlined_call_operand.hbm [shape: f32[8,16], index: 0, kind: input, shape index: {}]   ;;  %s114_s1 = inlined_call_operand.hbm [shape: f32[8,24], index: 1, kind: output, shape index: {}]  }
   0x1   :  { %7 = vsyncpa [#allocation4], 0  ;;  %s94_s6 = smov [#allocation2]  }
   0x2   :  { %s14_s7 = sshll.u32 %s94_s6, 4  ;;  %s15_s7 = int_to_ptr.vmem [resolvable:$true] %s14_s7 }
   0x3   :  { %s58_s8 = scalar_lea.vmem %s15_s7, 128  ;;  %p63_p1 = scmp.lt.s32.totalorder %s15_s7, %s15_s7 }
   0x4   :  { %p59_p0 = scmp.ne.s32.totalorder %s15_s7, %s58_s8  ;;  %p64_p2 = scmp.lt.s32.totalorder %s58_s8, %s58_s8 }
   0x6   :  { %p65_p3 = por %p64_p2, %p63_p1 }
   0x8   :  { %p66_p4 = pnand %p65_p3, %p59_p0 }
   0xa   :  { %69 = shalt.err (!%p66_p4)
}
   0xb   :  { %17 = dma.hbm_to_vmem [thread:$0]  %s113_s0, 128, %s15_s7, [#allocation3]  }
   0xc   :  { %90 = dma.done.wait [#allocation3], 128  }
   0xd   :  { %91 = vsyncadd [#allocation3], 4294967168  ;;  %v95_v0 = vmov 15   ;;  %v21_v1 = vld [vmem:[#allocation2] sm:$0xff]  ;;  %s96_s11 = smov [#allocation5]   ;;  %vm27_vm0 = vcmask 130048  }
   0xe   :  { %49 = vset.pattern.permute.xlu0 %v95_v0  ;;  %s37_s12 = sshll.u32 %s96_s11, 4  ;;  %vm29_vm1 = vcmask 195584   ;;  %s38_s12 = int_to_ptr.vmem [resolvable:$true] %s37_s12 }
   0xf   :  { %24 = vperm.xlu0 %49, %v21_v1   ;;  %s70_s13 = scalar_lea.vmem %s38_s12, 128  ;;  %p75_p6 = scmp.lt.s32.totalorder %s38_s12, %s38_s12 }
  0x10   :  { %p71_p5 = scmp.ne.s32.totalorder %s38_s12, %s70_s13  ;;  %p76_p7 = scmp.lt.s32.totalorder %s70_s13, %s70_s13 }
  0x12   :  { %p77_p8 = por %p76_p7, %p75_p6 }
  0x14   :  { %p78_p9 = pnand %p77_p8, %p71_p5 }
  0x8a   :  { %v25_v2 = vpop.permute.xlu0 %24 }
  0x8b   :  { %v28_v3 = vsel %vm27_vm0, %v21_v1, %v25_v2 }
  0x8c   :  { %30 = vst.msk [vmem:[#allocation5] sm:$0xff] %vm29_vm1, %v28_v3 }
  0x8d   :  { %81 = shalt.err (!%p78_p9)
}
  0x8e   :  { %40 = dma.vmem_to_hbm [thread:$0]  %s38_s12, 128, %s114_s1, [#allocation4]  }
  0x8f   :  { %92 = dma.done.wait [#allocation4], 128  }
  0x90   :  { %93 = vsyncadd [#allocation4], 4294967168 }
  0x91   :  { %44 = vsyncpa [#allocation3], 1 }
  0x92   :  { %45 = vsyncpa [#allocation4], 1 }

</bundles_post_ra>
